<compile_context>
chip_gen: v7x
topology: tpu7x:2x2x1
jax: 0.10.0
libtpu: 0.0.40
codegen_flags: <defaults>
</compile_context>

<pallas_src>
import numpy as np
import jax
import jax.numpy as jnp
from jax import lax
from jax.experimental import pallas as pl
from jax.experimental.pallas import tpu as pltpu


def _round_up(x, m):
    return ((x + m - 1) // m) * m


def _pick_batch_tile(b_pad, max_tile=2048):
    """Largest 128-multiple divisor of b_pad that fits the cap.

    b_pad is a multiple of 128.  For large batches the cap is also limited to
    b_pad // 2 so the parallel grid axis has >= 2 steps (v7x: 2 TensorCores).
    """
    cap = min(max_tile, max(128, b_pad // 2))
    best = 128
    tb = 128
    while tb <= cap:
        if b_pad % tb == 0:
            best = tb
        tb += 128
    return best


# ----------------------------- Pallas kernel --------------------------------
def _mf_rating_kernel(wu_ref, wi_ref, xu_ref, xi_ref, out_ref):
    # Contract on the minor (anchor) dim of both operands: the gathered rows
    # stay batch-major; Mosaic handles the transposed RHS inside VMEM.
    dn = (((1,), (1,)), ((), ()))
    ue = lax.dot_general(wu_ref[...], xu_ref[...], dn,
                         preferred_element_type=jnp.float32)   # (D, TB)
    ie = lax.dot_general(wi_ref[...], xi_ref[...], dn,
                         preferred_element_type=jnp.float32)   # (D, TB)
    # Row-wise dot product == reduce over the sublane (embedding) axis.
    # Batch lives on the 128-lane axis -> lane-dense (1, TB) store.
    out_ref[...] = jnp.sum(ue * ie, axis=0, keepdims=True)


def mf_rating_pallas(wu, wi, xu, xi, tb):
    """wu:(D,Ua) wi:(D,Ia) bf16; xu:(B_pad,Ua) xi:(B_pad,Ia) bf16 -> (1,B_pad) f32."""
    d, ua = wu.shape
    _, ia = wi.shape
    b_pad = xu.shape[0]
    grid = (b_pad // tb,)

    # Explicit VMEM budget: double-buffered activation tiles + resident weights
    # + double-buffered output + (D, TB) f32 intermediates + compiler headroom.
    act_bytes = 2 * tb * (ua + ia) * 2          # 2 buffers x bf16 tiles
    wt_bytes = 2 * d * (ua + ia) * 2            # resident weights (double-counted)
    out_bytes = 2 * tb * 4                      # 2 buffers x (1, TB) f32
    interm_bytes = 2 * d * tb * 4               # ue / ie f32 temporaries
    vmem_limit = int(act_bytes + wt_bytes + out_bytes + interm_bytes) + (8 << 20)

    return pl.pallas_call(
        _mf_rating_kernel,
        out_shape=jax.ShapeDtypeStruct((1, b_pad), jnp.float32),
        grid=grid,
        in_specs=[
            pl.BlockSpec((d, ua), lambda i: (0, 0)),    # user_A^T, VMEM-resident
            pl.BlockSpec((d, ia), lambda i: (0, 0)),    # item_A^T, VMEM-resident
            pl.BlockSpec((tb, ua), lambda i: (i, 0)),   # gathered user rows (batch-major)
            pl.BlockSpec((tb, ia), lambda i: (i, 0)),   # gathered item rows (batch-major)
        ],
        out_specs=pl.BlockSpec((1, tb), lambda i: (0, i)),   # lane-dense ratings
        compiler_params=pltpu.CompilerParams(
            dimension_semantics=("parallel",),   # sharded over v7x's 2 TCs when grid >= 2
            vmem_limit_bytes=vmem_limit,
        ),
    )(wu, wi, xu, xi)


# ----------------------------- forward glue ---------------------------------
def mf_forward(all_user_T_cd, user_A_cd, all_item_T_cd, item_A_cd,
               user_indices, item_indices, user_anchors, item_anchors,
               max_tile=2048):
    """Pallas-backed DynamicMFModel.forward.  Tables/factors already in bf16.
    Returns (B,) f32 ratings."""
    B = user_indices.shape[0]
    B_pad = _round_up(max(B, 1), 128)
    TB = _pick_batch_tile(B_pad, max_tile)

    # Pad batch with index 0 (always a valid row); padded ratings sliced off below.
    u_idx = jnp.pad(user_indices, (0, B_pad - B))
    i_idx = jnp.pad(item_indices, (0, B_pad - B))

    # Row gather stays XLA glue: one gather write + one kernel read of B rows.
    # Gather from the full-width bf16 table, then column-slice only the B_pad
    # gathered rows (never the whole table).
    xu = jnp.take(all_user_T_cd, u_idx, axis=0)[:, :user_anchors]   # (B_pad, Ua)
    xi = jnp.take(all_item_T_cd, i_idx, axis=0)[:, :item_anchors]   # (B_pad, Ia)

    wu = user_A_cd.T                                                # (D, Ua) tiny
    wi = item_A_cd.T                                                # (D, Ia) tiny

    out = mf_rating_pallas(wu, wi, xu, xi, TB)                      # (1, B_pad) f32
    return out[0, :B]                                               # (B,)


# ----------------------------- Model (params) -------------------------------
def init_weight(key, n, m):
    # Mirrors torch init_weight: abs(sqrt(2/n) * randn(n, m)), float32.
    limit = np.sqrt(2.0 / n).astype(np.float32)
    return jnp.abs(limit * jax.random.normal(key, (n, m), dtype=jnp.float32))


class DynamicMFModelPallas:
    COMPUTE_DTYPE = jnp.bfloat16

    def __init__(self, key, n_users, m_items, user_anchors, item_anchors,
                 latent_dim):
        self.num_users = n_users
        self.num_items = m_items
        self.user_anchors = user_anchors
        self.item_anchors = item_anchors
        self.latent_dim = latent_dim
        self.max_user_anchors = 100
        self.max_item_anchors = 100

        k1, k2, k3, k4 = jax.random.split(key, 4)
        # f32 masters (reference / training).
        self.all_user_T = init_weight(k1, self.num_users, self.max_user_anchors)
        self.all_user_A = init_weight(k2, self.max_user_anchors, self.latent_dim)
        self.all_item_T = init_weight(k3, self.num_items, self.max_item_anchors)
        self.all_item_A = init_weight(k4, self.max_item_anchors, self.latent_dim)

        # One-time bf16 copies used by the Pallas forward (no per-call full-table cast).
        cd = self.COMPUTE_DTYPE
        self.all_user_T_cd = self.all_user_T.astype(cd)
        self.all_user_A_cd = self.all_user_A.astype(cd)
        self.all_item_T_cd = self.all_item_T.astype(cd)
        self.all_item_A_cd = self.all_item_A.astype(cd)

    def forward(self, user_indices, item_indices):
        user_A = self.all_user_A_cd[:self.user_anchors]      # (Ua, D) tiny
        item_A = self.all_item_A_cd[:self.item_anchors]      # (Ia, D) tiny
        return mf_forward(self.all_user_T_cd, user_A,
                          self.all_item_T_cd, item_A,
                          user_indices, item_indices,
                          self.user_anchors, self.item_anchors)

    def forward_ref(self, user_indices, item_indices):
        # Pure-JAX reference in f32 with full-precision matmuls.
        user_T = self.all_user_T[:, :self.user_anchors]
        user_A = self.all_user_A[:self.user_anchors]
        item_T = self.all_item_T[:, :self.item_anchors]
        item_A = self.all_item_A[:self.item_anchors]
        hp = lax.Precision.HIGHEST
        ue = jnp.dot(jnp.take(user_T, user_indices, axis=0), user_A, precision=hp)
        ie = jnp.dot(jnp.take(item_T, item_indices, axis=0), item_A, precision=hp)
        return jnp.sum(ue * ie, axis=-1)


# ----------------------------------- main ------------------------------------
if __name__ == "__main__":
    key = jax.random.PRNGKey(0)
    k_params, k_u, k_i = jax.random.split(key, 3)

    n_users, m_items = 32, 48
    user_anchors, item_anchors = 16, 24
    latent_dim = 32
    batch = 8

    model = DynamicMFModelPallas(k_params, n_users, m_items,
                                 user_anchors, item_anchors, latent_dim)

    user_indices = jax.random.randint(k_u, (batch,), 0, n_users, dtype=jnp.int32)
    item_indices = jax.random.randint(k_i, (batch,), 0, m_items, dtype=jnp.int32)

    rating = jax.block_until_ready(model.forward(user_indices, item_indices))
    rating_ref = jax.block_until_ready(model.forward_ref(user_indices, item_indices))

    # bf16 tables/weights (f32 accumulation) -> bf16-level tolerance.
    np.testing.assert_allclose(np.asarray(rating), np.asarray(rating_ref),
                               rtol=2e-2, atol=2e-2)

    print("KERNEL_OK")
</pallas_src>

<mosaic_0001>
module attributes {stable_mosaic.version = 11 : i64} {
  func.func @_mf_rating_kernel(%arg0: i32, %arg1: memref<32x16xbf16, #tpu.memory_space<vmem>>, %arg2: memref<32x24xbf16, #tpu.memory_space<vmem>>, %arg3: memref<128x16xbf16, #tpu.memory_space<vmem>>, %arg4: memref<128x24xbf16, #tpu.memory_space<vmem>>, %arg5: memref<1x128xf32, #tpu.memory_space<vmem>>) attributes {dimension_semantics = [#tpu.dimension_semantics<parallel>], iteration_bounds = array<i64: 1>, scalar_prefetch = 0 : i64, scratch_operands = 0 : i64, tpu.core_type = #tpu.core_type<tc>, window_params = [{pipeline_mode = #tpu.pipeline_mode<synchronous>, transform_indices = @transform_0, window_bounds = array<i64: 32, 16>}, {pipeline_mode = #tpu.pipeline_mode<synchronous>, transform_indices = @transform_1, window_bounds = array<i64: 32, 24>}, {transform_indices = @transform_2, window_bounds = array<i64: 128, 16>}, {transform_indices = @transform_3, window_bounds = array<i64: 128, 24>}, {transform_indices = @transform_4, window_bounds = array<i64: 1, 128>}]} {
    %c0 = arith.constant 0 : index
    %c0_0 = arith.constant 0 : index
    %0 = vector.load %arg1[%c0, %c0_0] : memref<32x16xbf16, #tpu.memory_space<vmem>>, vector<32x16xbf16>
    %c0_1 = arith.constant 0 : index
    %c0_2 = arith.constant 0 : index
    %1 = vector.load %arg3[%c0_1, %c0_2] : memref<128x16xbf16, #tpu.memory_space<vmem>>, vector<128x16xbf16>
    %cst = arith.constant dense<0.000000e+00> : vector<32x128xf32>
    %2 = tpu.matmul %0, %1, %cst {dimension_numbers = #tpu.dot_dimension_numbers<[1], [1], [0], [0], [0, 0, 1, 0], [], []>} : vector<32x16xbf16>, vector<128x16xbf16>, vector<32x128xf32> -> vector<32x128xf32>
    %c0_3 = arith.constant 0 : index
    %c0_4 = arith.constant 0 : index
    %3 = vector.load %arg2[%c0_3, %c0_4] : memref<32x24xbf16, #tpu.memory_space<vmem>>, vector<32x24xbf16>
    %c0_5 = arith.constant 0 : index
    %c0_6 = arith.constant 0 : index
    %4 = vector.load %arg4[%c0_5, %c0_6] : memref<128x24xbf16, #tpu.memory_space<vmem>>, vector<128x24xbf16>
    %cst_7 = arith.constant dense<0.000000e+00> : vector<32x128xf32>
    %5 = tpu.matmul %3, %4, %cst_7 {dimension_numbers = #tpu.dot_dimension_numbers<[1], [1], [0], [0], [0, 0, 1, 0], [], []>} : vector<32x24xbf16>, vector<128x24xbf16>, vector<32x128xf32> -> vector<32x128xf32>
    %6 = arith.mulf %2, %5 : vector<32x128xf32>
    %cst_8 = arith.constant dense<0.000000e+00> : vector<128xf32>
    %7 = vector.multi_reduction <add>, %6, %cst_8 [0] : vector<32x128xf32> to vector<128xf32>
    %8 = vector.shape_cast %7 : vector<128xf32> to vector<1x128xf32>
    %c0_9 = arith.constant 0 : index
    %c0_10 = arith.constant 0 : index
    %9 = vector.load %arg5[%c0_9, %c0_10] : memref<1x128xf32, #tpu.memory_space<vmem>>, vector<1x128xf32>
    tpu.vector_store %arg5[%c0_9, %c0_10], %8 {strides = array<i32>} : memref<1x128xf32, #tpu.memory_space<vmem>>, vector<1x128xf32>,
    return
  }
  func.func @transform_0(%arg0: i32) -> (i32, i32) {
    %c0_i32 = arith.constant 0 : i32
    %c0_i32_0 = arith.constant 0 : i32
    %c0_i32_1 = arith.constant 0 : i32
    return %c0_i32, %c0_i32_0 : i32, i32
  }
  func.func @transform_1(%arg0: i32) -> (i32, i32) {
    %c0_i32 = arith.constant 0 : i32
    %c0_i32_0 = arith.constant 0 : i32
    %c0_i32_1 = arith.constant 0 : i32
    return %c0_i32, %c0_i32_0 : i32, i32
  }
  func.func @transform_2(%arg0: i32) -> (i32, i32) {
    %c0_i32 = arith.constant 0 : i32
    %c0_i32_0 = arith.constant 0 : i32
    return %arg0, %c0_i32 : i32, i32
  }
  func.func @transform_3(%arg0: i32) -> (i32, i32) {
    %c0_i32 = arith.constant 0 : i32
    %c0_i32_0 = arith.constant 0 : i32
    return %arg0, %c0_i32 : i32, i32
  }
  func.func @transform_4(%arg0: i32) -> (i32, i32) {
    %c0_i32 = arith.constant 0 : i32
    %c0_i32_0 = arith.constant 0 : i32
    return %c0_i32, %arg0 : i32, i32
  }
}

</mosaic_0001>

<bundles_post_ra>
// kernel: tpu_custom_call.1
= control target key start
LH: loop header
LB: loop body
LE: loop exit
PB: predicated region body
PF: predicated region fallthrough
CT: control target
= control target key end

     0   :  { %vm89_vm0 = vcmask 130048   ;;  %vm239_vm1 = vcmask 195584   ;;  %s626_s0 = inlined_call_operand.vmem [shape: bf16[32,16], index: 0, kind: input, shape index: {}]   ;;  %s627_s1 = inlined_call_operand.vmem [shape: bf16[32,24], index: 1, kind: input, shape index: {}]   ;;  %s628_s2 = inlined_call_operand.vmem [shape: bf16[128,16], index: 2, kind: input, shape index: {}]   ;;  %s629_s3 = inlined_call_operand.vmem [shape: bf16[128,24], index: 3, kind: input, shape index: {}]   ;;  %s630_s4 = inlined_call_operand.hbm [shape: f32[1,128], index: 4, kind: output, shape index: {}]  }
   0x1   :  { %v448_v0 = vld [vmem:[%s628_s2] sm:$0xff]   ;;  %v450_v3 = vld [vmem:[%s628_s2 + $0x8] sm:$0xff]   ;;  %v452_v7 = vld [vmem:[%s628_s2 + $0x10] sm:$0xff]  }
   0x2   :  { %v449_v1 = vld [vmem:[%s629_s3] sm:$0xff]   ;;  %431 = vmatprep.subr.msk.bf16.mxu0 %vm89_vm0, %v448_v0  ;;  %v97_v2 = vsel %vm89_vm0, %v448_v0, 0  ;;  %v451_v5 = vld [vmem:[%s629_s3 + $0x8] sm:$0xff]   ;;  %v100_v6 = vsel %vm89_vm0, %v450_v3, 0  ;;  %v453_v9 = vld [vmem:[%s629_s3 + $0x10] sm:$0xff]   ;;  %v103_v12 = vsel %vm89_vm0, %v452_v7, 0 }
   0x3   :  { %439 = vmatprep.subr.msk.bf16.mxu1 %vm239_vm1, %v449_v1  ;;  %392 = vmatpush3.bf16.xpose.msra.mxu0 %v97_v2  ;;  %v247_v4 = vsel %vm239_vm1, %v449_v1, 0  ;;  %v250_v8 = vsel %vm239_vm1, %v451_v5, 0  ;;  %v454_v10 = vld [vmem:[%s628_s2 + $0x18] sm:$0xff]   ;;  %v464_v13 = vld [vmem:[%s626_s0] sm:$0xff]   ;;  %v253_v14 = vsel %vm239_vm1, %v453_v9, 0 }
   0x4   :  { %412 = vmatpush3.bf16.xpose.msra.mxu1 %v247_v4  ;;  %432 = vmatprep.subr.msk.bf16.mxu0 %vm89_vm0, %v450_v3  ;;  %v455_v11 = vld [vmem:[%s629_s3 + $0x18] sm:$0xff]   ;;  %v465_v15 = vld [vmem:[%s627_s1] sm:$0xff]  }
   0x5   :  { %440 = vmatprep.subr.msk.bf16.mxu1 %vm239_vm1, %v451_v5  ;;  %407 = vmatprep.mubr.msk.bf16.mxu0 %vm89_vm0, %v464_v13 }
   0x6   :  { %427 = vmatprep.mubr.msk.bf16.mxu1 %vm239_vm1, %v465_v15 }
   0xb   :  { %394 = vmatpush3.bf16.xpose.msra.mxu0 %v100_v6 }
   0xc   :  { %414 = vmatpush3.bf16.xpose.msra.mxu1 %v250_v8  ;;  %433 = vmatprep.subr.msk.bf16.mxu0 %vm89_vm0, %v452_v7 }
   0xd   :  { %441 = vmatprep.subr.msk.bf16.mxu1 %vm239_vm1, %v453_v9 }
  0x13   :  { %396 = vmatpush3.bf16.xpose.msra.mxu0 %v103_v12 }
  0x14   :  { %416 = vmatpush3.bf16.xpose.msra.mxu1 %v253_v14  ;;  %434 = vmatprep.subr.msk.bf16.mxu0 %vm89_vm0, %v454_v10 }
  0x15   :  { %9 = vsyncpa [#allocation3], 0  ;;  %442 = vmatprep.subr.msk.bf16.mxu1 %vm239_vm1, %v455_v11  ;;  %v106_v16 = vsel %vm89_vm0, %v454_v10, 0  ;;  %v456_v17 = vld [vmem:[%s628_s2 + $0x20] sm:$0xff]   ;;  %v256_v18 = vsel %vm239_vm1, %v455_v11, 0  ;;  %v458_v21 = vld [vmem:[%s628_s2 + $0x28] sm:$0xff]  }
  0x16   :  { %v457_v19 = vld [vmem:[%s629_s3 + $0x20] sm:$0xff]   ;;  %v109_v20 = vsel %vm89_vm0, %v456_v17, 0  ;;  %v459_v23 = vld [vmem:[%s629_s3 + $0x28] sm:$0xff]   ;;  %v112_v24 = vsel %vm89_vm0, %v458_v21, 0  ;;  %v460_v25 = vld [vmem:[%s628_s2 + $0x30] sm:$0xff]  }
  0x17   :  { %v259_v22 = vsel %vm239_vm1, %v457_v19, 0  ;;  %v262_v26 = vsel %vm239_vm1, %v459_v23, 0  ;;  %v461_v27 = vld [vmem:[%s629_s3 + $0x30] sm:$0xff]   ;;  %v115_v28 = vsel %vm89_vm0, %v460_v25, 0  ;;  %v462_v29 = vld [vmem:[%s628_s2 + $0x38] sm:$0xff]   ;;  %v466_v34 = vld [vmem:[%s626_s0 + $0x8] sm:$0xff]  }
  0x18   :  { %v265_v30 = vsel %vm239_vm1, %v461_v27, 0  ;;  %v463_v31 = vld [vmem:[%s629_s3 + $0x38] sm:$0xff]   ;;  %v118_v32 = vsel %vm89_vm0, %v462_v29, 0  ;;  %v467_v35 = vld [vmem:[%s627_s1 + $0x8] sm:$0xff]   ;;  %s492_s0 = smov [#allocation2]  }
  0x19   :  { %v268_v33 = vsel %vm239_vm1, %v463_v31, 0  ;;  %s339_s1 = sshll.u32 %s492_s0, 4  ;;  %s340_s1 = int_to_ptr.vmem [resolvable:$true] %s339_s1 }
  0x1a   :  { %s468_s3 = scalar_lea.vmem %s340_s1, 16  ;;  %s472_s28 = scalar_lea.vmem %s340_s1, 32 }
  0x1b   :  { %398 = vmatpush3.bf16.xpose.msra.mxu0 %v106_v16  ;;  %p469_p0 = scmp.ne.s32.totalorder %s340_s1, %s468_s3  ;;  %p473_p1 = scmp.lt.s32.totalorder %s340_s1, %s340_s1 }
  0x1c   :  { %418 = vmatpush3.bf16.xpose.msra.mxu1 %v256_v18  ;;  %435 = vmatprep.subr.msk.bf16.mxu0 %vm89_vm0, %v456_v17  ;;  %p474_p2 = scmp.lt.s32.totalorder %s472_s28, %s468_s3 }
  0x1d   :  { %443 = vmatprep.subr.msk.bf16.mxu1 %vm239_vm1, %v457_v19 }
  0x1e   :  { %p475_p3 = por %p474_p2, %p473_p1 }
  0x20   :  { %p476_p4 = pnand %p475_p3, %p469_p0 }
  0x23   :  { %400 = vmatpush3.bf16.xpose.msra.mxu0 %v109_v20 }
  0x24   :  { %420 = vmatpush3.bf16.xpose.msra.mxu1 %v259_v22  ;;  %436 = vmatprep.subr.msk.bf16.mxu0 %vm89_vm0, %v458_v21 }
  0x25   :  { %444 = vmatprep.subr.msk.bf16.mxu1 %vm239_vm1, %v459_v23 }
  0x2b   :  { %402 = vmatpush3.bf16.xpose.msra.mxu0 %v112_v24 }
  0x2c   :  { %422 = vmatpush3.bf16.xpose.msra.mxu1 %v262_v26  ;;  %437 = vmatprep.subr.msk.bf16.mxu0 %vm89_vm0, %v460_v25 }
  0x2d   :  { %445 = vmatprep.subr.msk.bf16.mxu1 %vm239_vm1, %v461_v27 }
  0x33   :  { %404 = vmatpush3.bf16.xpose.msra.mxu0 %v115_v28 }
  0x34   :  { %424 = vmatpush3.bf16.xpose.msra.mxu1 %v265_v30  ;;  %438 = vmatprep.subr.msk.bf16.mxu0 %vm89_vm0, %v462_v29 }
  0x35   :  { %446 = vmatprep.subr.msk.bf16.mxu1 %vm239_vm1, %v463_v31 }
  0x3b   :  { %406 = vmatpush3.bf16.xpose.msra.mxu0 %v118_v32 }
  0x3c   :  { %426 = vmatpush3.bf16.xpose.msra.mxu1 %v268_v33 }
  0x42   :  { %408 = vmatmul.mubr.msk.bf16.vlgmr.msra.gmra.mrb[0].mxu0 %vm89_vm0, %v466_v34 }
  0x43   :  { %428 = vmatmul.mubr.msk.bf16.vlgmr.msra.gmra.mrb[0].mxu1 %vm239_vm1, %v467_v35 }
 0x115   :  { %v409_v36 = vpop.f32.mrb[0].mxu0 }
 0x116   :  { %v429_v37 = vpop.f32.mrb[0].mxu1  ;;  %v154_v38 = vpop.f32.mrb[1].mxu0 }
 0x117   :  { %v321_v39 = vmul.f32 %v429_v37, %v409_v36  ;;  %v304_v40 = vpop.f32.mrb[1].mxu1  ;;  %v410_v41 = vpop.f32.mrb[2].mxu0 }
 0x118   :  { %v319_v42 = vmul.f32 %v304_v40, %v154_v38  ;;  %v430_v43 = vpop.f32.mrb[2].mxu1  ;;  %v157_v44 = vpop.f32.mrb[3].mxu0 }
 0x119   :  { %v322_v45 = vmul.f32 %v430_v43, %v410_v41  ;;  %v307_v46 = vpop.f32.mrb[3].mxu1 }
 0x11a   :  { %v320_v47 = vmul.f32 %v307_v46, %v157_v44 }
 0x11c   :  { %v323_v48 = vadd.f32 %v320_v47, %v319_v42 }
 0x11e   :  { %v324_v49 = vadd.f32 %v323_v48, %v321_v39 }
 0x120   :  { %v325_v50 = vadd.f32 %v324_v49, %v322_v45 }
 0x122   :  { %v326_v51 = vrot.slane %v325_v50, 4 }
 0x124   :  { %v327_v52 = vadd.f32 %v326_v51, %v325_v50 }
 0x126   :  { %v328_v53 = vrot.slane %v327_v52, 2 }
 0x128   :  { %v329_v54 = vadd.f32 %v328_v53, %v327_v52 }
 0x12a   :  { %v330_v55 = vrot.slane %v329_v54, 1 }
 0x12c   :  { %v331_v56 = vadd.f32 %v330_v55, %v329_v54 }
 0x12e   :  { %332 = vst [vmem:[#allocation2] sm:$0x1] %v331_v56 }
 0x12f   :  { %479 = shalt.err (!%p476_p4)
}
 0x130   :  { %s480_s5 = scalar_lea.hbm %s630_s4, 16 }
 0x131   :  { %p481_p5 = scmp.ne.s32.totalorder %s630_s4, %s480_s5  ;;  %p484_p6 = scmp.lt.u32.totalorder %s480_s5, %s630_s4 }
 0x133   :  { %p486_p7 = pnand %p484_p6, %p481_p5 }
 0x135   :  { %489 = shalt.err (!%p486_p7)
}
 0x136   :  { %342 = dma.vmem_to_hbm [thread:$0]  %s340_s1, 16, %s630_s4, [#allocation3]  }
 0x137   :  { %490 = dma.done.wait [#allocation3], 16  }
 0x138   :  { %491 = vsyncadd [#allocation3], 4294967280 }
 0x139   :  { %346 = vsyncpa [#allocation3], 1 }

</bundles_post_ra>
